<compile_context>
chip_gen: v7x
topology: tpu7x:2x2x1
jax: 0.10.0
libtpu: 0.0.40
codegen_flags: <defaults>
</compile_context>

<pallas_src>
import jax
import jax.numpy as jnp
import numpy as np
from jax.experimental import pallas as pl
from jax.experimental.pallas import tpu as pltpu  # noqa: F401  (TPU backend)

MAX_SEQ_SIZE = 128   # params.MAX_SEQ_SIZE (lane-friendly choice)
N_CLASS = 8
BATCH = 8

C_PAD = 128                                    # class dim padded to full lanes
W_ROWS = ((MAX_SEQ_SIZE + 1 + 7) // 8) * 8     # 129 rows -> 136 (sublane pad)


def fft_model_kernel(x_ref, w_ref, o_ref):
    # x_ref: (B, S)          input rows (channel dim already squeezed)
    # w_ref: (136, 256)      packed params:
    #          [0:S,   0:S]   = W1_eff = C @ W1^T   (FFT real basis folded in)
    #          [S,     0:S]   = b1
    #          [0:S,   S: ]   = W2^T  (zero-padded to 128 output lanes)
    #          [S,     S: ]   = b2    (zero-padded)
    # o_ref: (B, C_PAD)      padded logits (cols >= N_CLASS are zero)
    S = MAX_SEQ_SIZE
    x = x_ref[...]

    # fused: real(fft(x)) @ W1^T + b1  ==  x @ W1_eff + b1, then ReLU (VPU)
    h = jnp.dot(x, w_ref[0:S, 0:S], preferred_element_type=jnp.float32)
    h = jnp.maximum(h + w_ref[S:S + 1, 0:S], 0.0)

    # ff2 (lane-dense padded N): h @ W2^T + b2
    out = jnp.dot(h, w_ref[0:S, S:S + C_PAD], preferred_element_type=jnp.float32)
    out = out + w_ref[S:S + 1, S:S + C_PAD]
    o_ref[...] = out.astype(o_ref.dtype)


def pack_params(w1, b1, w2, b2, seq):
    """Offline packing: fold FFT real basis into ff1 and pack all params into
    one (W_ROWS, seq + C_PAD) array (single weight DMA at kernel launch)."""
    n = np.arange(seq)
    cos_mat = np.cos(2.0 * np.pi * np.outer(n, n) / seq)          # f64 C[n,k]
    w1_eff = (cos_mat @ np.asarray(w1, np.float64).T).astype(np.float32)  # (S,S)

    n_class = np.asarray(w2).shape[0]
    w_all = np.zeros((W_ROWS, seq + C_PAD), np.float32)
    w_all[:seq, :seq] = w1_eff
    w_all[seq, :seq] = np.asarray(b1, np.float32)
    w_all[:seq, seq:seq + n_class] = np.asarray(w2, np.float32).T  # (S, C)
    w_all[seq, seq:seq + n_class] = np.asarray(b2, np.float32)
    return jnp.asarray(w_all)


@jax.jit
def fft_model_forward(x, w_all):
    """x: (B, 1, S) float32 (PyTorch NCL-style); returns (B, N_CLASS)."""
    B = x.shape[0]
    S = x.shape[-1]
    x2d = x.reshape(B, S)      # == torch.squeeze(x, 1) semantics on the output path

    cost = pl.CostEstimate(
        flops=2 * B * S * (S + C_PAD),
        transcendentals=0,
        bytes_accessed=4 * (B * S + W_ROWS * (S + C_PAD) + B * C_PAD),
    )

    # Single invocation, whole arrays resident in VMEM (no grid, no BlockSpecs):
    # 2 input DMAs (x, packed weights), 1 lane-dense output store.
    out_padded = pl.pallas_call(
        fft_model_kernel,
        out_shape=jax.ShapeDtypeStruct((B, C_PAD), jnp.float32),
        cost_estimate=cost,
    )(x2d, w_all)
    return out_padded[:, :N_CLASS]


def make_params(key, seq, n_class):
    """Deterministic PyTorch-style Linear init: U(-1/sqrt(fan_in), 1/sqrt(fan_in))."""
    k1, k2, k3, k4 = jax.random.split(key, 4)
    bound1 = 1.0 / np.sqrt(seq)
    w1 = jax.random.uniform(k1, (seq, seq), jnp.float32, -bound1, bound1)   # (out, in)
    b1 = jax.random.uniform(k2, (seq,), jnp.float32, -bound1, bound1)
    w2 = jax.random.uniform(k3, (n_class, seq), jnp.float32, -bound1, bound1)
    b2 = jax.random.uniform(k4, (n_class,), jnp.float32, -bound1, bound1)
    return w1, b1, w2, b2


def reference_forward(x, w1, b1, w2, b2):
    """Pure-JAX reference mirroring the PyTorch module (eval mode)."""
    xr = jnp.real(jnp.fft.fft(x, axis=-1)).astype(jnp.float32)        # (B,1,S)
    h = jnp.maximum(xr @ w1.T + b1, 0.0)                               # (B,1,S)
    out = h @ w2.T + b2                                                # (B,1,C)
    return jnp.squeeze(out, 1)


if __name__ == "__main__":
    key = jax.random.PRNGKey(0)
    kx, kp = jax.random.split(key)

    # input: (batch, 1, seq) like the PyTorch model (squeeze(x, 1) at the end)
    x = jax.random.normal(kx, (BATCH, 1, MAX_SEQ_SIZE), jnp.float32)

    w1, b1, w2, b2 = make_params(kp, MAX_SEQ_SIZE, N_CLASS)

    # offline fold + single-array packing (one weight DMA per call)
    w_all = pack_params(w1, b1, w2, b2, MAX_SEQ_SIZE)

    out = fft_model_forward(x, w_all)
    out = jax.block_until_ready(out)

    ref = reference_forward(x, w1, b1, w2, b2)
    np.testing.assert_allclose(np.asarray(out), np.asarray(ref),
                               rtol=1e-3, atol=1e-3)

    print("KERNEL_OK")
</pallas_src>

<mosaic_0001>
module attributes {stable_mosaic.version = 11 : i64} {
  func.func @fft_model_kernel(%arg0: memref<8x128xf32, #tpu.memory_space<vmem>>, %arg1: memref<136x256xf32, #tpu.memory_space<vmem>>, %arg2: memref<8x128xf32, #tpu.memory_space<vmem>>) attributes {dimension_semantics = [], scalar_prefetch = 0 : i64, scratch_operands = 0 : i64, tpu.core_type = #tpu.core_type<tc>} {
    %c0 = arith.constant 0 : index
    %c0_0 = arith.constant 0 : index
    %0 = vector.load %arg0[%c0, %c0_0] : memref<8x128xf32, #tpu.memory_space<vmem>>, vector<8x128xf32>
    %c0_1 = arith.constant 0 : index
    %c0_2 = arith.constant 0 : index
    %1 = vector.load %arg1[%c0_1, %c0_2] : memref<136x256xf32, #tpu.memory_space<vmem>>, vector<128x128xf32>
    %cst = arith.constant dense<0.000000e+00> : vector<8x128xf32>
    %2 = tpu.matmul %0, %1, %cst {dimension_numbers = #tpu.dot_dimension_numbers<[1], [0], [0], [1], [0, 0, 1, 1], [], []>} : vector<8x128xf32>, vector<128x128xf32>, vector<8x128xf32> -> vector<8x128xf32>
    %c128 = arith.constant 128 : index
    %c0_3 = arith.constant 0 : index
    %3 = vector.load %arg1[%c128, %c0_3] : memref<136x256xf32, #tpu.memory_space<vmem>>, vector<1x128xf32>
    %4 = vector.broadcast %3 : vector<1x128xf32> to vector<8x128xf32>
    %5 = arith.addf %2, %4 : vector<8x128xf32>
    %cst_4 = arith.constant 0.000000e+00 : f32
    %6 = vector.broadcast %cst_4 : f32 to vector<8x128xf32>
    %7 = arith.maximumf %5, %6 : vector<8x128xf32>
    %c0_5 = arith.constant 0 : index
    %c128_6 = arith.constant 128 : index
    %8 = vector.load %arg1[%c0_5, %c128_6] : memref<136x256xf32, #tpu.memory_space<vmem>>, vector<128x128xf32>
    %cst_7 = arith.constant dense<0.000000e+00> : vector<8x128xf32>
    %9 = tpu.matmul %7, %8, %cst_7 {dimension_numbers = #tpu.dot_dimension_numbers<[1], [0], [0], [1], [0, 0, 1, 1], [], []>} : vector<8x128xf32>, vector<128x128xf32>, vector<8x128xf32> -> vector<8x128xf32>
    %c128_8 = arith.constant 128 : index
    %c128_9 = arith.constant 128 : index
    %10 = vector.load %arg1[%c128_8, %c128_9] : memref<136x256xf32, #tpu.memory_space<vmem>>, vector<1x128xf32>
    %11 = vector.broadcast %10 : vector<1x128xf32> to vector<8x128xf32>
    %12 = arith.addf %9, %11 : vector<8x128xf32>
    %c0_10 = arith.constant 0 : index
    %c0_11 = arith.constant 0 : index
    %13 = vector.load %arg2[%c0_10, %c0_11] : memref<8x128xf32, #tpu.memory_space<vmem>>, vector<8x128xf32>
    tpu.vector_store %arg2[%c0_10, %c0_11], %12 {strides = array<i32>} : memref<8x128xf32, #tpu.memory_space<vmem>>, vector<8x128xf32>,
    return
  }
}

</mosaic_0001>

<bundles_post_ra>
// kernel: fft_model_forward.1
= control target key start
LH: loop header
LB: loop body
LE: loop exit
PB: predicated region body
PF: predicated region fallthrough
CT: control target
= control target key end

     0   :  { %7 = vsyncpa [#allocation3], 0  ;;  %s545_s0 = inlined_call_operand.hbm [shape: f32[8,128], index: 0, kind: input, shape index: {}]   ;;  %s546_s1 = inlined_call_operand.hbm [shape: f32[136,256], index: 1, kind: input, shape index: {}]   ;;  %s547_s2 = inlined_call_operand.hbm [shape: f32[8,128], index: 2, kind: output, shape index: {}]  }
   0x1   :  { %8 = vsyncpa [#allocation6], 0 }
   0x2   :  { %9 = vsyncpa [#allocation4], 0  ;;  %s463_s9 = smov [#allocation2]   ;;  %s464_s11 = smov [#allocation5]  }
   0x3   :  { %s16_s10 = sshll.u32 %s463_s9, 4  ;;  %s25_s12 = sshll.u32 %s464_s11, 4  ;;  %s17_s10 = int_to_ptr.vmem [resolvable:$true] %s16_s10  ;;  %s486_s12 = int_to_ptr.vmem [resolvable:$true] %s25_s12 }
   0x4   :  { %s391_s15 = scalar_lea.hbm %s545_s0, 128 }
   0x5   :  { %p392_p0 = scmp.ne.s32.totalorder %s545_s0, %s391_s15  ;;  %p395_p1 = scmp.lt.u32.totalorder %s391_s15, %s545_s0 }
   0x7   :  { %p397_p2 = pnand %p395_p1, %p392_p0 }
   0x9   :  { %400 = shalt.err (!%p397_p2)
}
   0xa   :  { %s401_s20 = scalar_lea.vmem %s17_s10, 128  ;;  %p406_p4 = scmp.lt.s32.totalorder %s17_s10, %s17_s10 }
   0xb   :  { %p402_p3 = scmp.ne.s32.totalorder %s17_s10, %s401_s20  ;;  %p407_p5 = scmp.lt.s32.totalorder %s401_s20, %s401_s20 }
   0xd   :  { %p408_p6 = por %p407_p5, %p406_p4 }
   0xf   :  { %p409_p7 = pnand %p408_p6, %p402_p3 }
  0x11   :  { %412 = shalt.err (!%p409_p7)
}
  0x12   :  { %19 = dma.hbm_to_vmem [thread:$0]  %s545_s0, 128, %s17_s10, [#allocation3]  }
  0x13   :  { %s413_s25 = scalar_lea.hbm %s546_s1, 4352 }
  0x14   :  { %p414_p8 = scmp.ne.s32.totalorder %s546_s1, %s413_s25  ;;  %p417_p9 = scmp.lt.u32.totalorder %s413_s25, %s546_s1 }
  0x16   :  { %p419_p10 = pnand %p417_p9, %p414_p8 }
  0x18   :  { %422 = shalt.err (!%p419_p10)
}
  0x19   :  { %s423_s30 = scalar_lea.vmem %s486_s12, 4352  ;;  %p428_p12 = scmp.lt.s32.totalorder %s486_s12, %s486_s12 }
  0x1a   :  { %p424_p11 = scmp.ne.s32.totalorder %s486_s12, %s423_s30  ;;  %p429_p13 = scmp.lt.s32.totalorder %s423_s30, %s423_s30 }
  0x1c   :  { %p430_p0 = por %p429_p13, %p428_p12 }
  0x1e   :  { %p431_p1 = pnand %p430_p0, %p424_p11 }
  0x20   :  { %434 = shalt.err (!%p431_p1)
}
  0x21   :  { %s465_s0 = smov 256   ;;  %s466_s3 = smov 16  }
  0x22   :  { %31 = dma.hbm_to_vmem [thread:$0]  %s546_s1, 4352, %s486_s12, [#allocation6], %s465_s0, %s465_s0, %s466_s3  }
  0x23   :  { %457 = dma.done.wait [#allocation3], 128  }
  0x24   :  { %458 = vsyncadd [#allocation3], 4294967168 }
  0x25   :  { %459 = dma.done.wait [#allocation6], 4352  }
  0x26   :  { %460 = vsyncadd [#allocation6], 4294962944  ;;  %v467_v0 = vmov 0.0|0.0   ;;  %vm468_vm0 = vmmov 0   ;;  %v469_v1 = vmov 0.0   ;;  %v39_v2 = vld [vmem:[#allocation5] sm:$0xff] }
  0x27   :  { %335 = vmatprep.subr.bf16.mxu0 %v467_v0  ;;  %297 = vmatprep.mubr.msk.f32.mxu0 %vm468_vm0, %v469_v1  ;;  %v40_v3 = vld [vmem:[#allocation5 + $0x10] sm:$0xff]  ;;  %v41_v4 = vld [vmem:[#allocation5 + $0x20] sm:$0xff]  ;;  %v127_v10 = vld [vmem:[#allocation5 + $0x8] sm:$0xff]  ;;  %s470_s1 = smov [#allocation7]  }
  0x28   :  { %359 = vmatprep.subr.bf16.mxu1 %v467_v0  ;;  %332 = vmatprep.mubr.msk.f32.mxu1 %vm468_vm0, %v469_v1  ;;  %v336_v5 = vpack.c.bf16 %v40_v3, %v39_v2  ;;  %v42_v6 = vld [vmem:[#allocation5 + $0x30] sm:$0xff]  ;;  %v43_v8 = vld [vmem:[#allocation5 + $0x40] sm:$0xff]  ;;  %v128_v11 = vld [vmem:[#allocation5 + $0x18] sm:$0xff]  ;;  %s221_s6 = sshll.u32 %s470_s1, 4  ;;  %s222_s6 = int_to_ptr.vmem [resolvable:$true] %s221_s6 }
  0x29   :  { %v339_v7 = vpack.c.bf16 %v42_v6, %v41_v4  ;;  %v44_v9 = vld [vmem:[#allocation5 + $0x50] sm:$0xff]  ;;  %v129_v12 = vld [vmem:[#allocation5 + $0x28] sm:$0xff]  ;;  %v130_v13 = vld [vmem:[#allocation5 + $0x38] sm:$0xff]  ;;  %v360_v15 = vpack.c.bf16 %v128_v11, %v127_v10  ;;  %s435_s7 = scalar_lea.vmem %s222_s6, 128  ;;  %p440_p3 = scmp.lt.s32.totalorder %s222_s6, %s222_s6 }
  0x2a   :  { %337 = vmatpush3.bf16.msra.mxu0 %v336_v5  ;;  %v342_v14 = vpack.c.bf16 %v44_v9, %v43_v8  ;;  %v45_v16 = vld [vmem:[#allocation5 + $0x60] sm:$0xff]  ;;  %v46_v17 = vld [vmem:[#allocation5 + $0x70] sm:$0xff]  ;;  %v363_v18 = vpack.c.bf16 %v130_v13, %v129_v12  ;;  %v131_v19 = vld [vmem:[#allocation5 + $0x48] sm:$0xff]  ;;  %p436_p2 = scmp.ne.s32.totalorder %s222_s6, %s435_s7  ;;  %p441_p4 = scmp.lt.s32.totalorder %s435_s7, %s435_s7 }
  0x2b   :  { %338 = vmatprep.subr.bf16.mxu0 %v467_v0  ;;  %361 = vmatpush3.bf16.msra.mxu1 %v360_v15  ;;  %v132_v20 = vld [vmem:[#allocation5 + $0x58] sm:$0xff]  ;;  %v345_v21 = vpack.c.bf16 %v46_v17, %v45_v16  ;;  %v47_v22 = vld [vmem:[#allocation5 + $0x80] sm:$0xff]  ;;  %v48_v23 = vld [vmem:[#allocation5 + $0x90] sm:$0xff] }
  0x2c   :  { %362 = vmatprep.subr.bf16.mxu1 %v467_v0  ;;  %v366_v24 = vpack.c.bf16 %v132_v20, %v131_v19  ;;  %v133_v25 = vld [vmem:[#allocation5 + $0x68] sm:$0xff]  ;;  %v134_v26 = vld [vmem:[#allocation5 + $0x78] sm:$0xff]  ;;  %v348_v27 = vpack.c.bf16 %v48_v23, %v47_v22  ;;  %v49_v28 = vld [vmem:[#allocation5 + $0xa0] sm:$0xff]  ;;  %p442_p5 = por %p441_p4, %p440_p3 }
  0x2d   :  { %v50_v29 = vld [vmem:[#allocation5 + $0xb0] sm:$0xff]  ;;  %v369_v30 = vpack.c.bf16 %v134_v26, %v133_v25  ;;  %v135_v31 = vld [vmem:[#allocation5 + $0x88] sm:$0xff]  ;;  %v136_v32 = vld [vmem:[#allocation5 + $0x98] sm:$0xff] }
  0x2e   :  { %340 = vmatpush3.bf16.msra.mxu0 %v339_v7  ;;  %v351_v33 = vpack.c.bf16 %v50_v29, %v49_v28  ;;  %v51_v34 = vld [vmem:[#allocation5 + $0xc0] sm:$0xff]  ;;  %v52_v35 = vld [vmem:[#allocation5 + $0xd0] sm:$0xff]  ;;  %v372_v36 = vpack.c.bf16 %v136_v32, %v135_v31  ;;  %v137_v37 = vld [vmem:[#allocation5 + $0xa8] sm:$0xff]  ;;  %p443_p6 = pnand %p442_p5, %p436_p2 }
  0x2f   :  { %341 = vmatprep.subr.bf16.mxu0 %v467_v0  ;;  %364 = vmatpush3.bf16.msra.mxu1 %v363_v18  ;;  %v138_v38 = vld [vmem:[#allocation5 + $0xb8] sm:$0xff]  ;;  %v354_v39 = vpack.c.bf16 %v52_v35, %v51_v34  ;;  %v53_v40 = vld [vmem:[#allocation5 + $0xe0] sm:$0xff]  ;;  %v54_v41 = vld [vmem:[#allocation5 + $0xf0] sm:$0xff] }
  0x30   :  { %365 = vmatprep.subr.bf16.mxu1 %v467_v0  ;;  %v375_v42 = vpack.c.bf16 %v138_v38, %v137_v37  ;;  %v139_v43 = vld [vmem:[#allocation5 + $0xc8] sm:$0xff]  ;;  %v140_v44 = vld [vmem:[#allocation5 + $0xd8] sm:$0xff]  ;;  %v357_v45 = vpack.c.bf16 %v54_v41, %v53_v40  ;;  %v55_v51 = vld [vmem:[#allocation5 + $0x100] ss:$0 sm:$0xff] }
  0x31   :  { %v378_v46 = vpack.c.bf16 %v140_v44, %v139_v43  ;;  %v38_v47 = vld [vmem:[#allocation2] sm:$0xff]  ;;  %v141_v48 = vld [vmem:[#allocation5 + $0xe8] sm:$0xff] }
  0x32   :  { %343 = vmatpush3.bf16.msra.mxu0 %v342_v14  ;;  %v142_v49 = vld [vmem:[#allocation5 + $0xf8] sm:$0xff]  ;;  %v143_v56 = vld [vmem:[#allocation5 + $0x108] ss:$0 sm:$0xff] }
  0x33   :  { %344 = vmatprep.subr.bf16.mxu0 %v467_v0  ;;  %367 = vmatpush3.bf16.msra.mxu1 %v366_v24  ;;  %v381_v50 = vpack.c.bf16 %v142_v49, %v141_v48 }
  0x34   :  { %368 = vmatprep.subr.bf16.mxu1 %v467_v0 }
  0x36   :  { %346 = vmatpush3.bf16.msra.mxu0 %v345_v21 }
  0x37   :  { %347 = vmatprep.subr.bf16.mxu0 %v467_v0  ;;  %370 = vmatpush3.bf16.msra.mxu1 %v369_v30 }
  0x38   :  { %371 = vmatprep.subr.bf16.mxu1 %v467_v0 }
  0x3a   :  { %349 = vmatpush3.bf16.msra.mxu0 %v348_v27 }
  0x3b   :  { %350 = vmatprep.subr.bf16.mxu0 %v467_v0  ;;  %373 = vmatpush3.bf16.msra.mxu1 %v372_v36 }
  0x3c   :  { %374 = vmatprep.subr.bf16.mxu1 %v467_v0 }
  0x3e   :  { %352 = vmatpush3.bf16.msra.mxu0 %v351_v33 }
  0x3f   :  { %353 = vmatprep.subr.bf16.mxu0 %v467_v0  ;;  %376 = vmatpush3.bf16.msra.mxu1 %v375_v42 }
  0x40   :  { %377 = vmatprep.subr.bf16.mxu1 %v467_v0 }
  0x42   :  { %355 = vmatpush3.bf16.msra.mxu0 %v354_v39 }
  0x43   :  { %356 = vmatprep.subr.bf16.mxu0 %v467_v0  ;;  %379 = vmatpush3.bf16.msra.mxu1 %v378_v46 }
  0x44   :  { %380 = vmatprep.subr.bf16.mxu1 %v467_v0 }
  0x46   :  { %358 = vmatpush3.bf16.msra.mxu0 %v357_v45 }
  0x47   :  { %382 = vmatpush3.bf16.msra.mxu1 %v381_v50 }
  0x49   :  { %298 = vmatmul.mubr.f32.vlgmr.msra.gmra.mrb[0].mxu0 %v38_v47 }
 0x11c   :  { %v122_v52 = vpop.f32.mrb[0].mxu0 }
 0x11d   :  { %v123_v53 = vadd.f32 %v122_v52, %v55_v51  ;;  %v299_v54 = vpop.f32.mrb[1].mxu0 }
 0x11f   :  { %v126_v55 = vmax.f32 %v123_v53, 0.0 }
 0x121   :  { %333 = vmatmul.mubr.f32.vlgmr.msra.gmra.mrb[0].mxu1 %v126_v55 }
 0x1f4   :  { %v210_v57 = vpop.f32.mrb[0].mxu1 }
 0x1f5   :  { %v211_v58 = vadd.f32 %v210_v57, %v143_v56  ;;  %v334_v59 = vpop.f32.mrb[1].mxu1 }
 0x1f7   :  { %214 = vst [vmem:[#allocation7] sm:$0xff] %v211_v58 }
 0x1f8   :  { %446 = shalt.err (!%p443_p6)
}
 0x1f9   :  { %s447_s10 = scalar_lea.hbm %s547_s2, 128 }
 0x1fa   :  { %p448_p7 = scmp.ne.s32.totalorder %s547_s2, %s447_s10  ;;  %p451_p8 = scmp.lt.u32.totalorder %s447_s10, %s547_s2 }
 0x1fc   :  { %p453_p9 = pnand %p451_p8, %p448_p7 }
 0x1fe   :  { %456 = shalt.err (!%p453_p9)
}
 0x1ff   :  { %224 = dma.vmem_to_hbm [thread:$0]  %s222_s6, 128, %s547_s2, [#allocation4]  }
 0x200   :  { %461 = dma.done.wait [#allocation4], 128  }
 0x201   :  { %462 = vsyncadd [#allocation4], 4294967168 }
 0x202   :  { %228 = vsyncpa [#allocation3], 1 }
 0x203   :  { %229 = vsyncpa [#allocation6], 1 }
 0x204   :  { %230 = vsyncpa [#allocation4], 1 }

</bundles_post_ra>
